<compile_context>
chip_gen: v5e
topology: v5e:2x2
jax: 0.10.0
libtpu: 0.0.40
codegen_flags: <defaults>
</compile_context>

<pallas_src>
import numpy as np
import jax
import jax.numpy as jnp
from jax import lax
from jax.experimental import pallas as pl
from jax.experimental.pallas import tpu as pltpu


def _pick_tile(n, max_tile):
    """Largest divisor of n that is <= max_tile and sublane friendly
    (multiple of 8), falling back to the full extent n."""
    max_tile = max(1, min(n, max_tile))
    for t in range(max_tile, 0, -1):
        if n % t == 0 and (t % 8 == 0 or t == n):
            return t
    return n


def _tile_caps(e_padded, vmem_budget_bytes=24 * 1024 * 1024):
    """Cap the row/col tile extents so the double-buffered f32 input tiles
    (2 row tiles + 1 col tile, 2 buffers each) fit inside the VMEM budget."""
    per_row_bytes = e_padded * 4 * 2            # f32, double buffered
    rows_allowed = max(8, vmem_budget_bytes // (4 * per_row_bytes))
    max_row = int(min(256, rows_allowed))
    max_col = int(min(512, rows_allowed))
    return max_row, max_col


def _npair_kernel(a_ref, p_ref, neg_ref, logterm_ref, sqsum_ref, acc_ref, ap_ref):
    # Grid: (anchor/positive row tiles, negative col tiles).
    # Axis 1 is the reduction axis: exp-sums accumulate in acc_ref.
    j = pl.program_id(1)
    a = a_ref[...].astype(jnp.float32)

    @pl.when(j == 0)
    def _init():
        p = p_ref[...].astype(jnp.float32)
        # Hoisted per-row work, reused across every negatives tile.
        ap_ref[...] = jnp.sum(a * p, axis=1, keepdims=True)            # anchor . positive
        sqsum_ref[...] = jnp.sum(a * a + p * p, axis=1, keepdims=True)  # ||a||^2 + ||p||^2
        acc_ref[...] = jnp.zeros_like(acc_ref)

    neg = neg_ref[...].astype(jnp.float32)
    # NT matmul on the MXU: contract the last (lane) dim of both operands.
    an = lax.dot_general(
        a, neg,
        dimension_numbers=(((1,), (1,)), ((), ())),
        preferred_element_type=jnp.float32,
    )                                                                   # [TM, TN]
    x = an - ap_ref[...]                                                # a_i.(n_j - p_i)
    acc_ref[...] += jnp.sum(jnp.exp(x), axis=1, keepdims=True)

    @pl.when(j == pl.num_programs(1) - 1)
    def _finalize():
        logterm_ref[...] = jnp.log(1.0 + acc_ref[...])


def n_pair_loss(anchor, positive, negative, l2_reg=0.02):
    """JAX/Pallas equivalent of NPairLoss.forward -> scalar loss."""
    n, e = anchor.shape
    # Pad the feature (lane) dim to a multiple of 128; zero padding changes
    # neither the dot products nor the squared norms.
    E = max(128, ((e + 127) // 128) * 128)
    if E != e:
        pad = ((0, 0), (0, E - e))
        anchor = jnp.pad(anchor, pad)
        positive = jnp.pad(positive, pad)
        negative = jnp.pad(negative, pad)

    max_row_tile, max_col_tile = _tile_caps(E)
    tm = _pick_tile(n, max_row_tile)
    tn = _pick_tile(n, max_col_tile)
    grid = (n // tm, n // tn)

    logterm, sqsum = pl.pallas_call(
        _npair_kernel,
        out_shape=(
            jax.ShapeDtypeStruct((n, 1), jnp.float32),   # log(1 + sum_j exp(x_ij))
            jax.ShapeDtypeStruct((n, 1), jnp.float32),   # sum_e (a^2 + p^2) per row
        ),
        grid_spec=pltpu.PrefetchScalarGridSpec(
            num_scalar_prefetch=0,
            grid=grid,
            in_specs=[
                pl.BlockSpec((tm, E), lambda i, j: (i, 0)),   # anchor row tile
                pl.BlockSpec((tm, E), lambda i, j: (i, 0)),   # positive row tile
                pl.BlockSpec((tn, E), lambda i, j: (j, 0)),   # negative col tile
            ],
            out_specs=[
                pl.BlockSpec((tm, 1), lambda i, j: (i, 0)),
                pl.BlockSpec((tm, 1), lambda i, j: (i, 0)),
            ],
            scratch_shapes=[
                pltpu.VMEM((tm, 1), jnp.float32),   # running exp-sum
                pltpu.VMEM((tm, 1), jnp.float32),   # cached anchor . positive
            ],
        ),
        compiler_params=pltpu.CompilerParams(
            dimension_semantics=("parallel", "arbitrary"),
            vmem_limit_bytes=48 * 1024 * 1024,   # headroom under v7x's 64 MiB VMEM
        ),
    )(anchor, positive, negative)

    # Tiny O(n) scalar reductions done as JAX glue.
    n_pair = jnp.mean(logterm)
    l2 = jnp.sum(sqsum) / n
    return n_pair + l2_reg * l2


if __name__ == "__main__":
    # Small deterministic example consistent with the module: n pairs of
    # e-dim embeddings (anchor, positive, negative each [n, e]).
    n, e = 8, 32
    l2_reg = 0.02
    key = jax.random.PRNGKey(0)
    ka, kp, kn = jax.random.split(key, 3)
    anchor = 0.5 * jax.random.normal(ka, (n, e), dtype=jnp.float32)
    positive = 0.5 * jax.random.normal(kp, (n, e), dtype=jnp.float32)
    negative = 0.5 * jax.random.normal(kn, (n, e), dtype=jnp.float32)

    loss = n_pair_loss(anchor, positive, negative, l2_reg=l2_reg)
    loss = jax.block_until_ready(loss)

    # Reference: exact PyTorch NPairLoss.forward math in float64 numpy.
    a = np.asarray(anchor, dtype=np.float64)
    p = np.asarray(positive, dtype=np.float64)
    ng = np.asarray(negative, dtype=np.float64)
    negatives = np.broadcast_to(ng[None, :, :], (n, n, e))             # expand(n, n, e)
    x = np.matmul(a[:, None, :],
                  np.transpose(negatives - p[:, None, :], (0, 2, 1)))  # (n, 1, n)
    x = np.sum(np.exp(x), axis=2)                                      # (n, 1)
    ref = np.mean(np.log(1.0 + x)) + l2_reg * (np.sum(a ** 2 + p ** 2) / n)

    np.testing.assert_allclose(float(loss), float(ref), rtol=1e-4, atol=1e-5)
    print("KERNEL_OK")
</pallas_src>

<mosaic_0001>
module attributes {stable_mosaic.version = 11 : i64} {
  func.func @_npair_kernel(%arg0: i32, %arg1: i32, %arg2: memref<8x128xf32, #tpu.memory_space<vmem>>, %arg3: memref<8x128xf32, #tpu.memory_space<vmem>>, %arg4: memref<8x128xf32, #tpu.memory_space<vmem>>, %arg5: memref<8x1xf32, #tpu.memory_space<vmem>>, %arg6: memref<8x1xf32, #tpu.memory_space<vmem>>, %arg7: memref<8x1xf32, #tpu.memory_space<vmem>>, %arg8: memref<8x1xf32, #tpu.memory_space<vmem>>) attributes {dimension_semantics = [#tpu.dimension_semantics<parallel>, #tpu.dimension_semantics<arbitrary>], iteration_bounds = array<i64: 1, 1>, scalar_prefetch = 0 : i64, scratch_operands = 2 : i64, tpu.core_type = #tpu.core_type<tc>, window_params = [{transform_indices = @transform_0, window_bounds = array<i64: 8, 128>}, {transform_indices = @transform_1, window_bounds = array<i64: 8, 128>}, {transform_indices = @transform_2, window_bounds = array<i64: 8, 128>}, {transform_indices = @transform_3, window_bounds = array<i64: 8, 1>}, {transform_indices = @transform_4, window_bounds = array<i64: 8, 1>}]} {
    %c0 = arith.constant 0 : index
    %c0_0 = arith.constant 0 : index
    %0 = vector.load %arg2[%c0, %c0_0] : memref<8x128xf32, #tpu.memory_space<vmem>>, vector<8x128xf32>
    %c0_i32 = arith.constant 0 : i32
    %1 = arith.cmpi eq, %arg1, %c0_i32 : i32
    %2 = arith.extui %1 : i1 to i32
    %c0_i32_1 = arith.constant 0 : i32
    %3 = arith.cmpi ne, %2, %c0_i32_1 : i32
    scf.if %3 {
      %c0_13 = arith.constant 0 : index
      %c0_14 = arith.constant 0 : index
      %18 = vector.load %arg3[%c0_13, %c0_14] : memref<8x128xf32, #tpu.memory_space<vmem>>, vector<8x128xf32>
      %19 = arith.mulf %0, %18 : vector<8x128xf32>
      %cst_15 = arith.constant dense<0.000000e+00> : vector<8xf32>
      %20 = vector.multi_reduction <add>, %19, %cst_15 [1] : vector<8x128xf32> to vector<8xf32>
      %21 = vector.shape_cast %20 : vector<8xf32> to vector<8x1xf32>
      %c0_16 = arith.constant 0 : index
      %c0_17 = arith.constant 0 : index
      %22 = vector.load %arg8[%c0_16, %c0_17] : memref<8x1xf32, #tpu.memory_space<vmem>>, vector<8x1xf32>
      tpu.vector_store %arg8[%c0_16, %c0_17], %21 {strides = array<i32>} : memref<8x1xf32, #tpu.memory_space<vmem>>, vector<8x1xf32>,
      %23 = arith.mulf %0, %0 : vector<8x128xf32>
      %24 = arith.mulf %18, %18 : vector<8x128xf32>
      %25 = arith.addf %23, %24 : vector<8x128xf32>
      %cst_18 = arith.constant dense<0.000000e+00> : vector<8xf32>
      %26 = vector.multi_reduction <add>, %25, %cst_18 [1] : vector<8x128xf32> to vector<8xf32>
      %27 = vector.shape_cast %26 : vector<8xf32> to vector<8x1xf32>
      %c0_19 = arith.constant 0 : index
      %c0_20 = arith.constant 0 : index
      %28 = vector.load %arg6[%c0_19, %c0_20] : memref<8x1xf32, #tpu.memory_space<vmem>>, vector<8x1xf32>
      tpu.vector_store %arg6[%c0_19, %c0_20], %27 {strides = array<i32>} : memref<8x1xf32, #tpu.memory_space<vmem>>, vector<8x1xf32>,
      %cst_21 = arith.constant 0.000000e+00 : f32
      %29 = vector.broadcast %cst_21 : f32 to vector<8x1xf32>
      %c0_22 = arith.constant 0 : index
      %c0_23 = arith.constant 0 : index
      %30 = vector.load %arg7[%c0_22, %c0_23] : memref<8x1xf32, #tpu.memory_space<vmem>>, vector<8x1xf32>
      tpu.vector_store %arg7[%c0_22, %c0_23], %29 {strides = array<i32>} : memref<8x1xf32, #tpu.memory_space<vmem>>, vector<8x1xf32>,
    } else {
    }
    %c0_2 = arith.constant 0 : index
    %c0_3 = arith.constant 0 : index
    %4 = vector.load %arg4[%c0_2, %c0_3] : memref<8x128xf32, #tpu.memory_space<vmem>>, vector<8x128xf32>
    %cst = arith.constant dense<0.000000e+00> : vector<8x8xf32>
    %5 = tpu.matmul %0, %4, %cst {dimension_numbers = #tpu.dot_dimension_numbers<[1], [1], [0], [0], [0, 0, 1, 0], [], []>} : vector<8x128xf32>, vector<8x128xf32>, vector<8x8xf32> -> vector<8x8xf32>
    %c0_4 = arith.constant 0 : index
    %c0_5 = arith.constant 0 : index
    %6 = vector.load %arg8[%c0_4, %c0_5] : memref<8x1xf32, #tpu.memory_space<vmem>>, vector<8x1xf32>
    %7 = vector.broadcast %6 : vector<8x1xf32> to vector<8x8xf32>
    %8 = arith.subf %5, %7 : vector<8x8xf32>
    %c0_6 = arith.constant 0 : index
    %c0_7 = arith.constant 0 : index
    %9 = vector.load %arg7[%c0_6, %c0_7] : memref<8x1xf32, #tpu.memory_space<vmem>>, vector<8x1xf32>
    %10 = math.exp %8 : vector<8x8xf32>
    %cst_8 = arith.constant dense<0.000000e+00> : vector<8xf32>
    %11 = vector.multi_reduction <add>, %10, %cst_8 [1] : vector<8x8xf32> to vector<8xf32>
    %12 = vector.shape_cast %11 : vector<8xf32> to vector<8x1xf32>
    %13 = arith.addf %9, %12 : vector<8x1xf32>
    %c0_9 = arith.constant 0 : index
    %c0_10 = arith.constant 0 : index
    %14 = vector.load %arg7[%c0_9, %c0_10] : memref<8x1xf32, #tpu.memory_space<vmem>>, vector<8x1xf32>
    tpu.vector_store %arg7[%c0_9, %c0_10], %13 {strides = array<i32>} : memref<8x1xf32, #tpu.memory_space<vmem>>, vector<8x1xf32>,
    %c0_i32_11 = arith.constant 0 : i32
    %15 = arith.cmpi eq, %arg1, %c0_i32_11 : i32
    %16 = arith.extui %15 : i1 to i32
    %c0_i32_12 = arith.constant 0 : i32
    %17 = arith.cmpi ne, %16, %c0_i32_12 : i32
    scf.if %17 {
      %c0_13 = arith.constant 0 : index
      %c0_14 = arith.constant 0 : index
      %18 = vector.load %arg7[%c0_13, %c0_14] : memref<8x1xf32, #tpu.memory_space<vmem>>, vector<8x1xf32>
      %cst_15 = arith.constant 1.000000e+00 : f32
      %19 = vector.broadcast %cst_15 : f32 to vector<8x1xf32>
      %20 = arith.addf %19, %18 : vector<8x1xf32>
      %21 = math.log %20 : vector<8x1xf32>
      %c0_16 = arith.constant 0 : index
      %c0_17 = arith.constant 0 : index
      %22 = vector.load %arg5[%c0_16, %c0_17] : memref<8x1xf32, #tpu.memory_space<vmem>>, vector<8x1xf32>
      tpu.vector_store %arg5[%c0_16, %c0_17], %21 {strides = array<i32>} : memref<8x1xf32, #tpu.memory_space<vmem>>, vector<8x1xf32>,
    } else {
    }
    return
  }
  func.func @transform_0(%arg0: i32, %arg1: i32) -> (i32, i32) {
    %c0_i32 = arith.constant 0 : i32
    %c0_i32_0 = arith.constant 0 : i32
    return %arg0, %c0_i32 : i32, i32
  }
  func.func @transform_1(%arg0: i32, %arg1: i32) -> (i32, i32) {
    %c0_i32 = arith.constant 0 : i32
    %c0_i32_0 = arith.constant 0 : i32
    return %arg0, %c0_i32 : i32, i32
  }
  func.func @transform_2(%arg0: i32, %arg1: i32) -> (i32, i32) {
    %c0_i32 = arith.constant 0 : i32
    %c0_i32_0 = arith.constant 0 : i32
    return %arg1, %c0_i32 : i32, i32
  }
  func.func @transform_3(%arg0: i32, %arg1: i32) -> (i32, i32) {
    %c0_i32 = arith.constant 0 : i32
    %c0_i32_0 = arith.constant 0 : i32
    return %arg0, %c0_i32 : i32, i32
  }
  func.func @transform_4(%arg0: i32, %arg1: i32) -> (i32, i32) {
    %c0_i32 = arith.constant 0 : i32
    %c0_i32_0 = arith.constant 0 : i32
    return %arg0, %c0_i32 : i32, i32
  }
}

</mosaic_0001>

<bundles_post_ra>
// kernel: tpu_custom_call.1
= control target key start
LH: loop header
LB: loop body
LE: loop exit
PB: predicated region body
PF: predicated region fallthrough
CT: control target
= control target key end

     0   :  { %10 = vsyncpa [#allocation5], 0  ;;  %s267_s0 = inlined_call_operand.hbm [shape: f32[8,128], index: 0, kind: input, shape index: {}]   ;;  %s268_s1 = inlined_call_operand.hbm [shape: f32[8,128], index: 1, kind: input, shape index: {}]   ;;  %s269_s2 = inlined_call_operand.hbm [shape: f32[8,128], index: 2, kind: input, shape index: {}]   ;;  %s270_s3 = inlined_call_operand.vmem [shape: f32[8,1], index: 3, kind: output, shape index: {0}]   ;;  %s271_s4 = inlined_call_operand.vmem [shape: f32[8,1], index: 4, kind: output, shape index: {1}]  }
   0x1   :  { %11 = vsyncpa [#allocation7], 0  ;;  %s28_s17 = sshll.u32 %s268_s1, 4  ;;  %s217_s18 = smov [#allocation6]   ;;  %s29_s17 = int_to_ptr.hbm [resolvable:$true] %s28_s17 }
   0x2   :  { %s30_s19 = sshll.u32 %s217_s18, 4  ;;  %s17_s22 = sshll.u32 %s267_s0, 4  ;;  %s31_s19 = int_to_ptr.vmem [resolvable:$true] %s30_s19  ;;  %s18_s22 = int_to_ptr.hbm [resolvable:$true] %s17_s22 }
   0x3   :  { %33 = dma.hbm_to_vmem [thread:$0]  %s29_s17, 128, %s31_s19, [#allocation7]  }
   0x4   :  { %s218_s23 = smov [#allocation4]   ;;  %s39_s27 = sshll.u32 %s269_s2, 4  ;;  %s40_s27 = int_to_ptr.hbm [resolvable:$true] %s39_s27 }
   0x5   :  { %s19_s24 = sshll.u32 %s218_s23, 4  ;;  %s219_s1 = smov [#allocation8]   ;;  %s20_s24 = int_to_ptr.vmem [resolvable:$true] %s19_s24 }
   0x6   :  { %22 = dma.hbm_to_vmem [thread:$0]  %s18_s22, 128, %s20_s24, [#allocation5]  }
   0x7   :  { %s41_s28 = sshll.u32 %s219_s1, 4  ;;  %s42_s28 = int_to_ptr.vmem [resolvable:$true] %s41_s28 }
   0x8   :  { %44 = dma.hbm_to_vmem [thread:$0]  %s40_s27, 128, %s42_s28, [#allocation7]  }
   0x9   :  { %213 = dma.done.wait [#allocation5], 128  }
   0xa   :  { %214 = vsyncadd [#allocation5], 4294967168 }
   0xb   :  { %215 = dma.done.wait [#allocation7], 256  }
   0xc   :  { %216 = vsyncadd [#allocation7], 4294967040  ;;  %v57_v0 = vld [vmem:[#allocation4] sm:$0xff]  ;;  %v62_v1 = vld [vmem:[#allocation6] sm:$0xff]  ;;  %v220_v4 = vmov 0   ;;  %vm66_vm0 = vcmask 7168  }
   0xd   :  { %v75_v2 = vld [vmem:[#allocation8] sm:$0xff]  ;;  %v63_v3 = vmul.f32 %v62_v1, %v57_v0  ;;  %136 = vset.pattern.permute.xlu0 %v220_v4  ;;  %v221_v7 = vmov 0.0   ;;  %vm106_vm1 = vcmask 64512   ;;  %v69_v14 = vmul.f32 %v62_v1, %v62_v1 }
   0xe   :  { %91 = vmatpush.xpose.msra.mxu0 %v75_v2  ;;  %74 = vst.msk [vmem:[#allocation2] sm:$0xff] %vm66_vm0, %v221_v7  ;;  %v68_v15 = vmul.f32 %v57_v0, %v57_v0 }
   0xf   :  { %64 = vadd.xlane.f32.xlu0 %v63_v3 }
  0x10   :  { %v70_v16 = vadd.f32 %v69_v14, %v68_v15 }
  0x11   :  { %92 = vmatmul.f32.vlgmr.msra.gmra.mxu0 %v57_v0 }
  0x15   :  { %v103_v17 = vld [vmem:[#allocation2] sm:$0xff] }
  0x82   :  { %v65_v5 = vpop.xlane.xlu0 %64 }
  0x83   :  { %67 = vst.msk [vmem:[#allocation3] sm:$0xff] %vm66_vm0, %v65_v5 }
  0x8a   :  { %v96_v6 = vld [vmem:[#allocation3] sm:$0xff] }
  0x8b   :  { %99 = vperm.xlu0 %136, %v96_v6  }
  0x8e   :  { %v93_v8 = vpop.f32.mrf.mxu0 }
  0xfd   :  { %v100_v9 = vpop.permute.xlu0 %99 }
  0xfe   :  { %v102_v10 = vsub.f32 %v93_v8, %v100_v9 }
 0x100   :  { %v104_v11 = vmul.f32 1.442695, %v102_v10 }
 0x102   :  { %137 = vpow2.f32 %v104_v11 }
 0x108   :  { %v138_v12 = vpop.eup %137 }
 0x109   :  { %v107_v13 = vsel %vm106_vm1, %v138_v12, 0.0 }
 0x10a   :  { %108 = vadd.xlane.f32.xlu1 %v107_v13 }
 0x112   :  { %71 = vadd.xlane.f32.xlu1 %v70_v16 }
 0x17d   :  { %v109_v18 = vpop.xlane.xlu1 %108 }
 0x17e   :  { %v110_v19 = vadd.f32 %v109_v18, %v103_v17 }
 0x180   :  { %112 = vst.msk [vmem:[#allocation2] sm:$0xff] %vm66_vm0, %v110_v19 }
 0x185   :  { %v72_v20 = vpop.xlane.xlu1 %71 }
 0x186   :  { %73 = vst.msk [vmem:[%s271_s4] sm:$0xff] %vm66_vm0, %v72_v20 }
 0x187   :  { %v116_v21 = vld [vmem:[#allocation2] sm:$0xff] }
 0x188   :  { %v117_v22 = vadd.f32 1.0, %v116_v21 }
 0x18a   :  { %139 = vlog2.f32 %v117_v22 }
 0x190   :  { %v140_v23 = vpop.eup %139 }
 0x191   :  { %v119_v24 = vmul.f32 0.6931472, %v140_v23 }
 0x193   :  { %120 = vst.msk [vmem:[%s270_s3] sm:$0xff] %vm66_vm0, %v119_v24 }
 0x194   :  { %129 = vsyncpa [#allocation5], 1 }
 0x195   :  { %130 = vsyncpa [#allocation7], 1 }

</bundles_post_ra>
